<compile_context>
chip_gen: v6e
topology: v6e:2x2x1
jax: 0.10.0
libtpu: 0.0.40
codegen_flags: <defaults>
</compile_context>

<pallas_src>
import functools
import math

import jax
import jax.numpy as jnp
from jax.experimental import pallas as pl
from jax.experimental.pallas import tpu as pltpu

MAX_LANE_TILE = 32 * 1024     # sample rows (lanes) processed per grid step


def _round_up(x, m):
    return ((x + m - 1) // m) * m


@functools.lru_cache(maxsize=None)
def _num_grid_cores():
    """Width of the leading 'parallel' grid axis: 2 on v7x (2 TC/chip), 1 on v5e/v6e."""
    try:
        kind = jax.devices()[0].device_kind.lower()
    except Exception:
        return 1
    return 2 if ("v7" in kind or "tpu7" in kind) else 1


def _ce_kernel(pred_ref, code_ref, out_ref, acc_ce, acc_cnt, *, seg_starts, seg_ends):
    i = pl.program_id(1)
    n_seg, D, L = acc_ce.shape

    @pl.when(i == 0)
    def _():
        acc_ce[...] = jnp.zeros_like(acc_ce)
        acc_cnt[...] = jnp.zeros_like(acc_cnt)

    logits = pred_ref[...].astype(jnp.float32)   # (D, L): classes on sublanes, rows on lanes
    code = code_ref[...]                         # (1, L) f32: 0 = masked/padded, c+1 = class c

    # log-softmax over the class (sublane) axis
    m = jnp.max(logits, axis=0, keepdims=True)                    # (1, L)
    z = logits - m
    e = jnp.exp(z)
    denom = jnp.sum(e, axis=0, keepdims=True)                     # (1, L)
    lse = jnp.log(denom)
    log_p = jnp.maximum(z - lse, -100.0)                          # torch BCELoss clamp
    # log(1 - p) = log((denom - e) / denom): exact, no reciprocal or p>1 guard needed.
    # denom >= e element-wise in fp, so the argument is >= 0; log(0) -> -inf -> clamped.
    log_1mp = jnp.maximum(jnp.log(denom - e) - lse, -100.0)

    cls = jax.lax.broadcasted_iota(jnp.int32, (D, L), 0).astype(jnp.float32)
    is_tgt = cls == (code - 1.0)                                  # one-hot reconstruction
    rv = (code > 0.0).astype(jnp.float32)                         # (1, L) row-valid mask
    # per-element negative-BCE contribution (<= 0); masked rows / padded lanes contribute 0
    ll = jnp.where(is_tgt, log_p, log_1mp) * rv

    if n_seg == 1:
        acc_ce[0] = acc_ce[0] + ll
        acc_cnt[0] = acc_cnt[0] + rv
    else:
        for s in range(n_seg):
            @pl.when(jnp.logical_and(i >= seg_starts[s], i < seg_ends[s]))
            def _(s=s):
                acc_ce[s] = acc_ce[s] + ll
                acc_cnt[s] = acc_cnt[s] + rv

    # last step per core: fold lane-wide partials to 128 lanes (128-aligned slices + adds,
    # pure VPU) and write one tiny output block; no lane-wide HBM writeback remains.
    @pl.when(i == pl.num_programs(1) - 1)
    def _():
        red_ce = acc_ce[:, :, 0:128]
        red_ct = acc_cnt[:, :, 0:128]
        for j in range(1, L // 128):
            lo = j * 128
            red_ce = red_ce + acc_ce[:, :, lo:lo + 128]
            red_ct = red_ct + acc_cnt[:, :, lo:lo + 128]
        merged = jnp.concatenate([red_ce, red_ct], axis=1)        # (n_seg, D+1, 128)
        out_ref[...] = merged[:, None, :, :]


def _per_class_ce(pairs, *, max_lane_tile=MAX_LANE_TILE):
    """pairs: list of (pred, true) arrays sharing the same trailing class dim D.

    Returns (ce_sums -- (n_seg, D) float32 per-class BCE sums over masked rows,
             counts  -- (n_seg,)  float32 number of masked rows per segment).
    Targets are assumed to be one-hot rows x {0,1} mask (all-zero row = masked out).
    """
    assert max_lane_tile % 128 == 0
    D = pairs[0][0].shape[-1]
    n_seg = len(pairs)
    for p, t in pairs:
        assert p.shape[-1] == D and t.shape[-1] == D
        assert p.dtype == pairs[0][0].dtype
    ncores = _num_grid_cores()

    rows = [math.prod(p.shape[:-1]) for p, _ in pairs]
    lane_tile = min(max_lane_tile,
                    _round_up(max(1, -(-max(rows) // ncores)), 128))

    # prep: reshape + target->label-code + pad + concat in the natural (rows, D) layout,
    # then ONE transpose of the combined prediction slab to the lane-dense (D, rows) layout.
    pred_rows, code_rows = [], []
    seg_block_start, tpc = [], []
    blocks_so_far = 0
    for (p, t), r in zip(pairs, rows):
        rp = _round_up(r, lane_tile * ncores)
        p2 = p.reshape(r, D)                                # keep native dtype (no upcast)
        t2 = t.reshape(r, D)
        nz = t2 != 0
        valid = jnp.any(nz, axis=-1)
        cls = jnp.argmax(nz, axis=-1)
        code = jnp.where(valid, cls + 1, 0).astype(jnp.float32)   # 0 = masked, c+1 = class c
        if rp != r:
            p2 = jnp.pad(p2, ((0, rp - r), (0, 0)))         # zero logits  => finite softmax
            code = jnp.pad(code, (0, rp - r))               # zero code    => padded lanes masked
        pred_rows.append(p2)
        code_rows.append(code)
        seg_block_start.append(blocks_so_far)
        tpc.append(rp // (lane_tile * ncores))              # lane tiles per core for this segment
        blocks_so_far += rp // lane_tile

    pred_cat = pred_rows[0] if n_seg == 1 else jnp.concatenate(pred_rows, axis=0)
    pred_slab = jnp.transpose(pred_cat)                     # (D, R_total) lane-dense
    code_cat = code_rows[0] if n_seg == 1 else jnp.concatenate(code_rows)
    code_slab = code_cat[None, :]                           # (1, R_total)

    tpc_total = sum(tpc)
    seg_starts = [0]
    for s in range(1, n_seg):
        seg_starts.append(seg_starts[-1] + tpc[s - 1])
    seg_ends = [seg_starts[s] + tpc[s] for s in range(n_seg)]

    def _block_index(c, i):
        # per-core step i -> lane-block index in the concatenated slab (static segment layout)
        blk = seg_block_start[-1] + c * tpc[-1] + (i - seg_starts[-1])
        for s in range(n_seg - 2, -1, -1):
            blk = jnp.where(i < seg_ends[s],
                            seg_block_start[s] + c * tpc[s] + (i - seg_starts[s]),
                            blk)
        return blk

    in_map = lambda c, i: (0, _block_index(c, i))
    out_map = lambda c, i: (0, c, 0, 0)

    kernel = functools.partial(_ce_kernel,
                               seg_starts=tuple(seg_starts),
                               seg_ends=tuple(seg_ends))

    n_elem = pred_slab.size
    out_bytes = n_seg * ncores * (D + 1) * 128 * 4
    cost = pl.CostEstimate(
        flops=14 * n_elem,
        transcendentals=2 * n_elem,
        bytes_accessed=int(pred_slab.size * pred_slab.dtype.itemsize
                           + code_slab.size * 4 + out_bytes))

    part = pl.pallas_call(
        kernel,
        out_shape=jax.ShapeDtypeStruct((n_seg, ncores, D + 1, 128), jnp.float32),
        grid_spec=pltpu.PrefetchScalarGridSpec(
            num_scalar_prefetch=0,
            grid=(ncores, tpc_total),
            in_specs=[
                pl.BlockSpec((D, lane_tile), in_map),
                pl.BlockSpec((1, lane_tile), in_map),
            ],
            out_specs=pl.BlockSpec((n_seg, 1, D + 1, 128), out_map),
            scratch_shapes=[
                pltpu.VMEM((n_seg, D, lane_tile), jnp.float32),
                pltpu.VMEM((n_seg, 1, lane_tile), jnp.float32),
            ]),
        compiler_params=pltpu.CompilerParams(
            dimension_semantics=("parallel", "arbitrary")),
        cost_estimate=cost,
    )(pred_slab, code_slab)

    red = jnp.sum(part, axis=(1, 3))                        # (n_seg, D+1): tiny final reduce
    ce = -red[:, :D]                                        # accumulator holds -BCE
    cnt = red[:, D]
    return ce, cnt


@jax.jit
def _update_metrics(pred_X, true_X, pred_E, true_E):
    DX, DE = pred_X.shape[-1], pred_E.shape[-1]
    rX = math.prod(pred_X.shape[:-1])
    rE = math.prod(pred_E.shape[:-1])
    # fuse atoms+bonds into one launch only when their row counts are comparable; otherwise a
    # shared lane tile would pad the small (atom) segment by up to ~8x of real HBM/VPU work.
    fuse = (DX == DE and pred_X.dtype == pred_E.dtype
            and max(rX, rE) <= 4 * min(rX, rE))
    if fuse:
        ce, cnt = _per_class_ce([(pred_X, true_X), (pred_E, true_E)])
        return ce[0], cnt[0], ce[1], cnt[1]
    ce_a, cnt_a = _per_class_ce([(pred_X, true_X)])
    ce_b, cnt_b = _per_class_ce([(pred_E, true_E)])
    return ce_a[0], cnt_a[0], ce_b[0], cnt_b[0]


# ---- host-side metric bookkeeping (mirrors MetricCollection / CEPerClass state) ----

_ATOM_CLASS_NAMES = {
    'H': 'HydrogenCE', 'B': 'BoronCE', 'C': 'CarbonCE', 'N': 'NitroCE',
    'O': 'OxyCE', 'F': 'FluorCE', 'Al': 'AlCE', 'Si': 'SiCE',
    'P': 'PhosphorusCE', 'S': 'SulfurCE', 'Cl': 'ClCE', 'As': 'AsCE',
    'Br': 'BrCE', 'I': 'IodineCE', 'Hg': 'HgCE', 'Bi': 'BiCE',
}
_BOND_CLASS_NAMES = ['NoBondCE', 'SingleCE', 'DoubleCE', 'TripleCE', 'AromaticCE']


class TrainMolecularMetricsPallas:
    """Pallas-backed equivalent of TrainMolecularMetrics.forward.

    No learnable parameters exist in the torch module; only running metric state
    (total_ce, total_samples) per class, kept here as jnp arrays.
    """

    def __init__(self, atom_decoder):
        self.atom_names = [_ATOM_CLASS_NAMES[a] for a in atom_decoder]
        self.bond_names = list(_BOND_CLASS_NAMES)
        self.reset()

    def reset(self):
        na, nb = len(self.atom_names), len(self.bond_names)
        self._atom_ce = jnp.zeros((na,), jnp.float32)
        self._atom_n = jnp.zeros((), jnp.float32)
        self._bond_ce = jnp.zeros((nb,), jnp.float32)
        self._bond_n = jnp.zeros((), jnp.float32)

    def __call__(self, pred_X, true_X, pred_E, true_E, log: bool):
        a_ce, a_n, b_ce, b_n = _update_metrics(pred_X, true_X, pred_E, true_E)
        self._atom_ce = self._atom_ce + a_ce
        self._atom_n = self._atom_n + a_n
        self._bond_ce = self._bond_ce + b_ce
        self._bond_n = self._bond_n + b_n
        if not log:
            return None
        to_log = {}
        atom_vals = self._atom_ce / self._atom_n
        for name, v in zip(self.atom_names, atom_vals):
            to_log['train/' + name] = float(v)
        bond_vals = self._bond_ce / self._bond_n
        for name, v in zip(self.bond_names, bond_vals):
            to_log['train/' + name] = float(v)
        # TODO(synk): wandb.log / torchmetrics dist_reduce_fx have no Pallas equivalent; dict returned.
        return to_log


# ---- pure-JAX reference for correctness ----

def _ref_per_class(pred, true):
    D = pred.shape[-1]
    p2 = pred.reshape(-1, D).astype(jnp.float32)
    t2 = true.reshape(-1, D).astype(jnp.float32)
    mask = jnp.any(t2 != 0.0, axis=-1)
    prob = jax.nn.softmax(p2, axis=-1)
    log_p = jnp.maximum(jnp.log(prob), -100.0)
    log_1mp = jnp.maximum(jnp.log(1.0 - prob), -100.0)
    bce = -(t2 * log_p + (1.0 - t2) * log_1mp)
    bce = jnp.where(mask[:, None], bce, 0.0)
    return bce.sum(axis=0), mask.sum().astype(jnp.float32)


if __name__ == "__main__":
    key = jax.random.PRNGKey(0)
    bs, n = 2, 16
    atom_decoder = ['H', 'C', 'N', 'O', 'F']   # QM9-style
    DX = len(atom_decoder)                      # 5 atom classes
    DE = 5                                      # 5 bond classes

    k1, k2, k3, k4, k5 = jax.random.split(key, 5)

    # predictions: logits
    pred_X = jax.random.normal(k1, (bs, n, DX), jnp.float32)
    pred_E = jax.random.normal(k2, (bs, n, n, DE), jnp.float32)

    # targets: one-hot, with some rows fully zeroed out (masked entries)
    x_idx = jax.random.randint(k3, (bs, n), 0, DX)
    true_X = jax.nn.one_hot(x_idx, DX, dtype=jnp.float32)
    node_mask = (jax.random.uniform(k5, (bs, n)) > 0.25).astype(jnp.float32)
    true_X = true_X * node_mask[..., None]

    e_idx = jax.random.randint(k4, (bs, n, n), 0, DE)
    true_E = jax.nn.one_hot(e_idx, DE, dtype=jnp.float32)
    pair_mask = node_mask[:, :, None] * node_mask[:, None, :]
    true_E = true_E * pair_mask[..., None]

    metrics = TrainMolecularMetricsPallas(atom_decoder)
    to_log = metrics(pred_X, true_X, pred_E, true_E, log=True)

    jax.block_until_ready(metrics._atom_ce)
    jax.block_until_ready(metrics._bond_ce)

    # verify against pure-JAX reference
    ref_a_ce, ref_a_n = _ref_per_class(pred_X, true_X)
    ref_b_ce, ref_b_n = _ref_per_class(pred_E, true_E)
    ref = {}
    for name, v in zip(metrics.atom_names, ref_a_ce / ref_a_n):
        ref['train/' + name] = float(v)
    for name, v in zip(metrics.bond_names, ref_b_ce / ref_b_n):
        ref['train/' + name] = float(v)
    for k in ref:
        assert abs(ref[k] - to_log[k]) <= 1e-4 + 1e-4 * abs(ref[k]), (k, ref[k], to_log[k])

    # extra check: fused multi-segment path with a forced small lane tile (exercises the
    # per-segment accumulator routing, the multi-step grid and the in-kernel lane fold).
    ce_f, cnt_f = jax.jit(lambda px, tx, pe, te: _per_class_ce(
        [(px, tx), (pe, te)], max_lane_tile=256))(pred_X, true_X, pred_E, true_E)
    jax.block_until_ready(ce_f)
    assert jnp.allclose(ce_f[0], ref_a_ce, rtol=1e-4, atol=1e-4)
    assert jnp.allclose(ce_f[1], ref_b_ce, rtol=1e-4, atol=1e-4)
    assert abs(float(cnt_f[0]) - float(ref_a_n)) < 0.5
    assert abs(float(cnt_f[1]) - float(ref_b_n)) < 0.5

    print("KERNEL_OK")
</pallas_src>

<mosaic_0001>
module attributes {stable_mosaic.version = 11 : i64} {
  func.func @_ce_kernel(%arg0: i32, %arg1: i32, %arg2: memref<5x512xf32, #tpu.memory_space<vmem>>, %arg3: memref<1x512xf32, #tpu.memory_space<vmem>>, %arg4: memref<1x1x6x128xf32, #tpu.memory_space<vmem>>, %arg5: memref<1x5x512xf32, #tpu.memory_space<vmem>>, %arg6: memref<1x1x512xf32, #tpu.memory_space<vmem>>) attributes {dimension_semantics = [#tpu.dimension_semantics<parallel>, #tpu.dimension_semantics<arbitrary>], iteration_bounds = array<i64: 1, 1>, scalar_prefetch = 0 : i64, scratch_operands = 2 : i64, tpu.core_type = #tpu.core_type<tc>, window_params = [{transform_indices = @transform_0, window_bounds = array<i64: 5, 512>}, {transform_indices = @transform_1, window_bounds = array<i64: 1, 512>}, {transform_indices = @transform_2, window_bounds = array<i64: 1, 1, 6, 128>}]} {
    %c0_i32 = arith.constant 0 : i32
    %0 = arith.cmpi eq, %arg1, %c0_i32 : i32
    %1 = arith.extui %0 : i1 to i32
    %c0_i32_0 = arith.constant 0 : i32
    %2 = arith.cmpi ne, %1, %c0_i32_0 : i32
    scf.if %2 {
      %cst_23 = arith.constant 0.000000e+00 : f32
      %52 = vector.broadcast %cst_23 : f32 to vector<1x5x512xf32>
      %c0_24 = arith.constant 0 : index
      %c0_25 = arith.constant 0 : index
      %c0_26 = arith.constant 0 : index
      %53 = vector.load %arg5[%c0_24, %c0_25, %c0_26] : memref<1x5x512xf32, #tpu.memory_space<vmem>>, vector<1x5x512xf32>
      tpu.vector_store %arg5[%c0_24, %c0_25, %c0_26], %52 {strides = array<i32>} : memref<1x5x512xf32, #tpu.memory_space<vmem>>, vector<1x5x512xf32>,
      %cst_27 = arith.constant 0.000000e+00 : f32
      %54 = vector.broadcast %cst_27 : f32 to vector<1x1x512xf32>
      %c0_28 = arith.constant 0 : index
      %c0_29 = arith.constant 0 : index
      %c0_30 = arith.constant 0 : index
      %55 = vector.load %arg6[%c0_28, %c0_29, %c0_30] : memref<1x1x512xf32, #tpu.memory_space<vmem>>, vector<1x1x512xf32>
      tpu.vector_store %arg6[%c0_28, %c0_29, %c0_30], %54 {strides = array<i32>} : memref<1x1x512xf32, #tpu.memory_space<vmem>>, vector<1x1x512xf32>,
    } else {
    }
    %c0 = arith.constant 0 : index
    %c0_1 = arith.constant 0 : index
    %3 = vector.load %arg2[%c0, %c0_1] : memref<5x512xf32, #tpu.memory_space<vmem>>, vector<5x512xf32>
    %c0_2 = arith.constant 0 : index
    %c0_3 = arith.constant 0 : index
    %4 = vector.load %arg3[%c0_2, %c0_3] : memref<1x512xf32, #tpu.memory_space<vmem>>, vector<1x512xf32>
    %cst = arith.constant dense<0xFF800000> : vector<512xf32>
    %5 = vector.multi_reduction <maximumf>, %3, %cst [0] : vector<5x512xf32> to vector<512xf32>
    %6 = vector.shape_cast %5 : vector<512xf32> to vector<1x512xf32>
    %7 = vector.broadcast %6 : vector<1x512xf32> to vector<5x512xf32>
    %8 = arith.subf %3, %7 : vector<5x512xf32>
    %9 = math.exp %8 : vector<5x512xf32>
    %cst_4 = arith.constant dense<0.000000e+00> : vector<512xf32>
    %10 = vector.multi_reduction <add>, %9, %cst_4 [0] : vector<5x512xf32> to vector<512xf32>
    %11 = vector.shape_cast %10 : vector<512xf32> to vector<1x512xf32>
    %12 = math.log %11 : vector<1x512xf32>
    %13 = vector.broadcast %12 : vector<1x512xf32> to vector<5x512xf32>
    %14 = arith.subf %8, %13 : vector<5x512xf32>
    %cst_5 = arith.constant -1.000000e+02 : f32
    %15 = vector.broadcast %cst_5 : f32 to vector<5x512xf32>
    %16 = arith.maximumf %14, %15 : vector<5x512xf32>
    %17 = vector.broadcast %11 : vector<1x512xf32> to vector<5x512xf32>
    %18 = arith.subf %17, %9 : vector<5x512xf32>
    %19 = math.log %18 : vector<5x512xf32>
    %20 = vector.broadcast %12 : vector<1x512xf32> to vector<5x512xf32>
    %21 = arith.subf %19, %20 : vector<5x512xf32>
    %cst_6 = arith.constant -1.000000e+02 : f32
    %22 = vector.broadcast %cst_6 : f32 to vector<5x512xf32>
    %23 = arith.maximumf %21, %22 : vector<5x512xf32>
    %24 = tpu.iota {dimensions = array<i32: 0>} : vector<5x512xi32>
    %25 = arith.sitofp %24 : vector<5x512xi32> to vector<5x512xf32>
    %cst_7 = arith.constant 1.000000e+00 : f32
    %26 = vector.broadcast %cst_7 : f32 to vector<1x512xf32>
    %27 = arith.subf %4, %26 : vector<1x512xf32>
    %28 = vector.broadcast %27 : vector<1x512xf32> to vector<5x512xf32>
    %29 = arith.cmpf oeq, %25, %28 : vector<5x512xf32>
    %cst_8 = arith.constant 0.000000e+00 : f32
    %30 = vector.broadcast %cst_8 : f32 to vector<1x512xf32>
    %31 = arith.cmpf ogt, %4, %30 : vector<1x512xf32>
    %32 = arith.extui %31 : vector<1x512xi1> to vector<1x512xi32>
    %33 = arith.sitofp %32 : vector<1x512xi32> to vector<1x512xf32>
    %34 = arith.select %29, %16, %23 : vector<5x512xi1>, vector<5x512xf32>
    %35 = vector.broadcast %33 : vector<1x512xf32> to vector<5x512xf32>
    %36 = arith.mulf %34, %35 : vector<5x512xf32>
    %c0_9 = arith.constant 0 : index
    %c0_10 = arith.constant 0 : index
    %c0_11 = arith.constant 0 : index
    %37 = vector.load %arg5[%c0_9, %c0_10, %c0_11] : memref<1x5x512xf32, #tpu.memory_space<vmem>>, vector<1x5x512xf32>
    %38 = vector.shape_cast %37 : vector<1x5x512xf32> to vector<5x512xf32>
    %39 = arith.addf %38, %36 : vector<5x512xf32>
    %c0_12 = arith.constant 0 : index
    %c0_13 = arith.constant 0 : index
    %c0_14 = arith.constant 0 : index
    %40 = vector.load %arg5[%c0_12, %c0_13, %c0_14] : memref<1x5x512xf32, #tpu.memory_space<vmem>>, vector<1x5x512xf32>
    %41 = vector.shape_cast %40 : vector<1x5x512xf32> to vector<5x512xf32>
    %42 = vector.shape_cast %39 : vector<5x512xf32> to vector<1x5x512xf32>
    tpu.vector_store %arg5[%c0_12, %c0_13, %c0_14], %42 {strides = array<i32>} : memref<1x5x512xf32, #tpu.memory_space<vmem>>, vector<1x5x512xf32>,
    %c0_15 = arith.constant 0 : index
    %c0_16 = arith.constant 0 : index
    %c0_17 = arith.constant 0 : index
    %43 = vector.load %arg6[%c0_15, %c0_16, %c0_17] : memref<1x1x512xf32, #tpu.memory_space<vmem>>, vector<1x1x512xf32>
    %44 = vector.shape_cast %43 : vector<1x1x512xf32> to vector<1x512xf32>
    %45 = arith.addf %44, %33 : vector<1x512xf32>
    %c0_18 = arith.constant 0 : index
    %c0_19 = arith.constant 0 : index
    %c0_20 = arith.constant 0 : index
    %46 = vector.load %arg6[%c0_18, %c0_19, %c0_20] : memref<1x1x512xf32, #tpu.memory_space<vmem>>, vector<1x1x512xf32>
    %47 = vector.shape_cast %46 : vector<1x1x512xf32> to vector<1x512xf32>
    %48 = vector.shape_cast %45 : vector<1x512xf32> to vector<1x1x512xf32>
    tpu.vector_store %arg6[%c0_18, %c0_19, %c0_20], %48 {strides = array<i32>} : memref<1x1x512xf32, #tpu.memory_space<vmem>>, vector<1x1x512xf32>,
    %c0_i32_21 = arith.constant 0 : i32
    %49 = arith.cmpi eq, %arg1, %c0_i32_21 : i32
    %50 = arith.extui %49 : i1 to i32
    %c0_i32_22 = arith.constant 0 : i32
    %51 = arith.cmpi ne, %50, %c0_i32_22 : i32
    scf.if %51 {
      %c0_23 = arith.constant 0 : index
      %c0_24 = arith.constant 0 : index
      %c0_25 = arith.constant 0 : index
      %52 = vector.load %arg5[%c0_23, %c0_24, %c0_25] : memref<1x5x512xf32, #tpu.memory_space<vmem>>, vector<1x5x128xf32>
      %c0_26 = arith.constant 0 : index
      %c0_27 = arith.constant 0 : index
      %c0_28 = arith.constant 0 : index
      %53 = vector.load %arg6[%c0_26, %c0_27, %c0_28] : memref<1x1x512xf32, #tpu.memory_space<vmem>>, vector<1x1x128xf32>
      %c0_29 = arith.constant 0 : index
      %c0_30 = arith.constant 0 : index
      %c128 = arith.constant 128 : index
      %54 = vector.load %arg5[%c0_29, %c0_30, %c128] : memref<1x5x512xf32, #tpu.memory_space<vmem>>, vector<1x5x128xf32>
      %55 = arith.addf %52, %54 : vector<1x5x128xf32>
      %c0_31 = arith.constant 0 : index
      %c0_32 = arith.constant 0 : index
      %c128_33 = arith.constant 128 : index
      %56 = vector.load %arg6[%c0_31, %c0_32, %c128_33] : memref<1x1x512xf32, #tpu.memory_space<vmem>>, vector<1x1x128xf32>
      %57 = arith.addf %53, %56 : vector<1x1x128xf32>
      %c0_34 = arith.constant 0 : index
      %c0_35 = arith.constant 0 : index
      %c256 = arith.constant 256 : index
      %58 = vector.load %arg5[%c0_34, %c0_35, %c256] : memref<1x5x512xf32, #tpu.memory_space<vmem>>, vector<1x5x128xf32>
      %59 = arith.addf %55, %58 : vector<1x5x128xf32>
      %c0_36 = arith.constant 0 : index
      %c0_37 = arith.constant 0 : index
      %c256_38 = arith.constant 256 : index
      %60 = vector.load %arg6[%c0_36, %c0_37, %c256_38] : memref<1x1x512xf32, #tpu.memory_space<vmem>>, vector<1x1x128xf32>
      %61 = arith.addf %57, %60 : vector<1x1x128xf32>
      %c0_39 = arith.constant 0 : index
      %c0_40 = arith.constant 0 : index
      %c384 = arith.constant 384 : index
      %62 = vector.load %arg5[%c0_39, %c0_40, %c384] : memref<1x5x512xf32, #tpu.memory_space<vmem>>, vector<1x5x128xf32>
      %63 = arith.addf %59, %62 : vector<1x5x128xf32>
      %c0_41 = arith.constant 0 : index
      %c0_42 = arith.constant 0 : index
      %c384_43 = arith.constant 384 : index
      %64 = vector.load %arg6[%c0_41, %c0_42, %c384_43] : memref<1x1x512xf32, #tpu.memory_space<vmem>>, vector<1x1x128xf32>
      %65 = arith.addf %61, %64 : vector<1x1x128xf32>
      %66 = tpu.concatenate %63, %65 in 1 : vector<1x5x128xf32>, vector<1x1x128xf32> -> vector<1x6x128xf32>
      %67 = vector.shape_cast %66 : vector<1x6x128xf32> to vector<1x1x6x128xf32>
      %c0_44 = arith.constant 0 : index
      %c0_45 = arith.constant 0 : index
      %c0_46 = arith.constant 0 : index
      %c0_47 = arith.constant 0 : index
      %68 = vector.load %arg4[%c0_44, %c0_45, %c0_46, %c0_47] : memref<1x1x6x128xf32, #tpu.memory_space<vmem>>, vector<1x1x6x128xf32>
      tpu.vector_store %arg4[%c0_44, %c0_45, %c0_46, %c0_47], %67 {strides = array<i32>} : memref<1x1x6x128xf32, #tpu.memory_space<vmem>>, vector<1x1x6x128xf32>,
    } else {
    }
    return
  }
  func.func @transform_0(%arg0: i32, %arg1: i32) -> (i32, i32) {
    %c1_i32 = arith.constant 1 : i32
    %0 = arith.muli %arg0, %c1_i32 : i32
    %c0_i32 = arith.constant 0 : i32
    %1 = arith.addi %c0_i32, %0 : i32
    %c0_i32_0 = arith.constant 0 : i32
    %2 = arith.subi %arg1, %c0_i32_0 : i32
    %3 = arith.addi %1, %2 : i32
    %c0_i32_1 = arith.constant 0 : i32
    %c0_i32_2 = arith.constant 0 : i32
    return %c0_i32_1, %3 : i32, i32
  }
  func.func @transform_1(%arg0: i32, %arg1: i32) -> (i32, i32) {
    %c1_i32 = arith.constant 1 : i32
    %0 = arith.muli %arg0, %c1_i32 : i32
    %c0_i32 = arith.constant 0 : i32
    %1 = arith.addi %c0_i32, %0 : i32
    %c0_i32_0 = arith.constant 0 : i32
    %2 = arith.subi %arg1, %c0_i32_0 : i32
    %3 = arith.addi %1, %2 : i32
    %c0_i32_1 = arith.constant 0 : i32
    %c0_i32_2 = arith.constant 0 : i32
    return %c0_i32_1, %3 : i32, i32
  }
  func.func @transform_2(%arg0: i32, %arg1: i32) -> (i32, i32, i32, i32) {
    %c0_i32 = arith.constant 0 : i32
    %c0_i32_0 = arith.constant 0 : i32
    %c0_i32_1 = arith.constant 0 : i32
    %c0_i32_2 = arith.constant 0 : i32
    return %c0_i32, %arg0, %c0_i32_0, %c0_i32_1 : i32, i32, i32, i32
  }
}

module attributes {stable_mosaic.version = 11 : i64} {
  func.func @_ce_kernel(%arg0: i32, %arg1: i32, %arg2: memref<5x128xf32, #tpu.memory_space<vmem>>, %arg3: memref<1x128xf32, #tpu.memory_space<vmem>>, %arg4: memref<1x1x6x128xf32, #tpu.memory_space<vmem>>, %arg5: memref<1x5x128xf32, #tpu.memory_space<vmem>>, %arg6: memref<1x1x128xf32, #tpu.memory_space<vmem>>) attributes {dimension_semantics = [#tpu.dimension_semantics<parallel>, #tpu.dimension_semantics<arbitrary>], iteration_bounds = array<i64: 1, 1>, scalar_prefetch = 0 : i64, scratch_operands = 2 : i64, tpu.core_type = #tpu.core_type<tc>, window_params = [{transform_indices = @transform_0, window_bounds = array<i64: 5, 128>}, {transform_indices = @transform_1, window_bounds = array<i64: 1, 128>}, {transform_indices = @transform_2, window_bounds = array<i64: 1, 1, 6, 128>}]} {
    %c0_i32 = arith.constant 0 : i32
    %0 = arith.cmpi eq, %arg1, %c0_i32 : i32
    %1 = arith.extui %0 : i1 to i32
    %c0_i32_0 = arith.constant 0 : i32
    %2 = arith.cmpi ne, %1, %c0_i32_0 : i32
    scf.if %2 {
      %cst_23 = arith.constant 0.000000e+00 : f32
      %52 = vector.broadcast %cst_23 : f32 to vector<1x5x128xf32>
      %c0_24 = arith.constant 0 : index
      %c0_25 = arith.constant 0 : index
      %c0_26 = arith.constant 0 : index
      %53 = vector.load %arg5[%c0_24, %c0_25, %c0_26] : memref<1x5x128xf32, #tpu.memory_space<vmem>>, vector<1x5x128xf32>
      tpu.vector_store %arg5[%c0_24, %c0_25, %c0_26], %52 {strides = array<i32>} : memref<1x5x128xf32, #tpu.memory_space<vmem>>, vector<1x5x128xf32>,
      %cst_27 = arith.constant 0.000000e+00 : f32
      %54 = vector.broadcast %cst_27 : f32 to vector<1x1x128xf32>
      %c0_28 = arith.constant 0 : index
      %c0_29 = arith.constant 0 : index
      %c0_30 = arith.constant 0 : index
      %55 = vector.load %arg6[%c0_28, %c0_29, %c0_30] : memref<1x1x128xf32, #tpu.memory_space<vmem>>, vector<1x1x128xf32>
      tpu.vector_store %arg6[%c0_28, %c0_29, %c0_30], %54 {strides = array<i32>} : memref<1x1x128xf32, #tpu.memory_space<vmem>>, vector<1x1x128xf32>,
    } else {
    }
    %c0 = arith.constant 0 : index
    %c0_1 = arith.constant 0 : index
    %3 = vector.load %arg2[%c0, %c0_1] : memref<5x128xf32, #tpu.memory_space<vmem>>, vector<5x128xf32>
    %c0_2 = arith.constant 0 : index
    %c0_3 = arith.constant 0 : index
    %4 = vector.load %arg3[%c0_2, %c0_3] : memref<1x128xf32, #tpu.memory_space<vmem>>, vector<1x128xf32>
    %cst = arith.constant dense<0xFF800000> : vector<128xf32>
    %5 = vector.multi_reduction <maximumf>, %3, %cst [0] : vector<5x128xf32> to vector<128xf32>
    %6 = vector.shape_cast %5 : vector<128xf32> to vector<1x128xf32>
    %7 = vector.broadcast %6 : vector<1x128xf32> to vector<5x128xf32>
    %8 = arith.subf %3, %7 : vector<5x128xf32>
    %9 = math.exp %8 : vector<5x128xf32>
    %cst_4 = arith.constant dense<0.000000e+00> : vector<128xf32>
    %10 = vector.multi_reduction <add>, %9, %cst_4 [0] : vector<5x128xf32> to vector<128xf32>
    %11 = vector.shape_cast %10 : vector<128xf32> to vector<1x128xf32>
    %12 = math.log %11 : vector<1x128xf32>
    %13 = vector.broadcast %12 : vector<1x128xf32> to vector<5x128xf32>
    %14 = arith.subf %8, %13 : vector<5x128xf32>
    %cst_5 = arith.constant -1.000000e+02 : f32
    %15 = vector.broadcast %cst_5 : f32 to vector<5x128xf32>
    %16 = arith.maximumf %14, %15 : vector<5x128xf32>
    %17 = vector.broadcast %11 : vector<1x128xf32> to vector<5x128xf32>
    %18 = arith.subf %17, %9 : vector<5x128xf32>
    %19 = math.log %18 : vector<5x128xf32>
    %20 = vector.broadcast %12 : vector<1x128xf32> to vector<5x128xf32>
    %21 = arith.subf %19, %20 : vector<5x128xf32>
    %cst_6 = arith.constant -1.000000e+02 : f32
    %22 = vector.broadcast %cst_6 : f32 to vector<5x128xf32>
    %23 = arith.maximumf %21, %22 : vector<5x128xf32>
    %24 = tpu.iota {dimensions = array<i32: 0>} : vector<5x128xi32>
    %25 = arith.sitofp %24 : vector<5x128xi32> to vector<5x128xf32>
    %cst_7 = arith.constant 1.000000e+00 : f32
    %26 = vector.broadcast %cst_7 : f32 to vector<1x128xf32>
    %27 = arith.subf %4, %26 : vector<1x128xf32>
    %28 = vector.broadcast %27 : vector<1x128xf32> to vector<5x128xf32>
    %29 = arith.cmpf oeq, %25, %28 : vector<5x128xf32>
    %cst_8 = arith.constant 0.000000e+00 : f32
    %30 = vector.broadcast %cst_8 : f32 to vector<1x128xf32>
    %31 = arith.cmpf ogt, %4, %30 : vector<1x128xf32>
    %32 = arith.extui %31 : vector<1x128xi1> to vector<1x128xi32>
    %33 = arith.sitofp %32 : vector<1x128xi32> to vector<1x128xf32>
    %34 = arith.select %29, %16, %23 : vector<5x128xi1>, vector<5x128xf32>
    %35 = vector.broadcast %33 : vector<1x128xf32> to vector<5x128xf32>
    %36 = arith.mulf %34, %35 : vector<5x128xf32>
    %c0_9 = arith.constant 0 : index
    %c0_10 = arith.constant 0 : index
    %c0_11 = arith.constant 0 : index
    %37 = vector.load %arg5[%c0_9, %c0_10, %c0_11] : memref<1x5x128xf32, #tpu.memory_space<vmem>>, vector<1x5x128xf32>
    %38 = vector.shape_cast %37 : vector<1x5x128xf32> to vector<5x128xf32>
    %39 = arith.addf %38, %36 : vector<5x128xf32>
    %c0_12 = arith.constant 0 : index
    %c0_13 = arith.constant 0 : index
    %c0_14 = arith.constant 0 : index
    %40 = vector.load %arg5[%c0_12, %c0_13, %c0_14] : memref<1x5x128xf32, #tpu.memory_space<vmem>>, vector<1x5x128xf32>
    %41 = vector.shape_cast %40 : vector<1x5x128xf32> to vector<5x128xf32>
    %42 = vector.shape_cast %39 : vector<5x128xf32> to vector<1x5x128xf32>
    tpu.vector_store %arg5[%c0_12, %c0_13, %c0_14], %42 {strides = array<i32>} : memref<1x5x128xf32, #tpu.memory_space<vmem>>, vector<1x5x128xf32>,
    %c0_15 = arith.constant 0 : index
    %c0_16 = arith.constant 0 : index
    %c0_17 = arith.constant 0 : index
    %43 = vector.load %arg6[%c0_15, %c0_16, %c0_17] : memref<1x1x128xf32, #tpu.memory_space<vmem>>, vector<1x1x128xf32>
    %44 = vector.shape_cast %43 : vector<1x1x128xf32> to vector<1x128xf32>
    %45 = arith.addf %44, %33 : vector<1x128xf32>
    %c0_18 = arith.constant 0 : index
    %c0_19 = arith.constant 0 : index
    %c0_20 = arith.constant 0 : index
    %46 = vector.load %arg6[%c0_18, %c0_19, %c0_20] : memref<1x1x128xf32, #tpu.memory_space<vmem>>, vector<1x1x128xf32>
    %47 = vector.shape_cast %46 : vector<1x1x128xf32> to vector<1x128xf32>
    %48 = vector.shape_cast %45 : vector<1x128xf32> to vector<1x1x128xf32>
    tpu.vector_store %arg6[%c0_18, %c0_19, %c0_20], %48 {strides = array<i32>} : memref<1x1x128xf32, #tpu.memory_space<vmem>>, vector<1x1x128xf32>,
    %c0_i32_21 = arith.constant 0 : i32
    %49 = arith.cmpi eq, %arg1, %c0_i32_21 : i32
    %50 = arith.extui %49 : i1 to i32
    %c0_i32_22 = arith.constant 0 : i32
    %51 = arith.cmpi ne, %50, %c0_i32_22 : i32
    scf.if %51 {
      %c0_23 = arith.constant 0 : index
      %c0_24 = arith.constant 0 : index
      %c0_25 = arith.constant 0 : index
      %52 = vector.load %arg5[%c0_23, %c0_24, %c0_25] : memref<1x5x128xf32, #tpu.memory_space<vmem>>, vector<1x5x128xf32>
      %c0_26 = arith.constant 0 : index
      %c0_27 = arith.constant 0 : index
      %c0_28 = arith.constant 0 : index
      %53 = vector.load %arg6[%c0_26, %c0_27, %c0_28] : memref<1x1x128xf32, #tpu.memory_space<vmem>>, vector<1x1x128xf32>
      %54 = tpu.concatenate %52, %53 in 1 : vector<1x5x128xf32>, vector<1x1x128xf32> -> vector<1x6x128xf32>
      %55 = vector.shape_cast %54 : vector<1x6x128xf32> to vector<1x1x6x128xf32>
      %c0_29 = arith.constant 0 : index
      %c0_30 = arith.constant 0 : index
      %c0_31 = arith.constant 0 : index
      %c0_32 = arith.constant 0 : index
      %56 = vector.load %arg4[%c0_29, %c0_30, %c0_31, %c0_32] : memref<1x1x6x128xf32, #tpu.memory_space<vmem>>, vector<1x1x6x128xf32>
      tpu.vector_store %arg4[%c0_29, %c0_30, %c0_31, %c0_32], %55 {strides = array<i32>} : memref<1x1x6x128xf32, #tpu.memory_space<vmem>>, vector<1x1x6x128xf32>,
    } else {
    }
    return
  }
  func.func @transform_0(%arg0: i32, %arg1: i32) -> (i32, i32) {
    %c1_i32 = arith.constant 1 : i32
    %0 = arith.muli %arg0, %c1_i32 : i32
    %c0_i32 = arith.constant 0 : i32
    %1 = arith.addi %c0_i32, %0 : i32
    %c0_i32_0 = arith.constant 0 : i32
    %2 = arith.subi %arg1, %c0_i32_0 : i32
    %3 = arith.addi %1, %2 : i32
    %c0_i32_1 = arith.constant 0 : i32
    %c0_i32_2 = arith.constant 0 : i32
    return %c0_i32_1, %3 : i32, i32
  }
  func.func @transform_1(%arg0: i32, %arg1: i32) -> (i32, i32) {
    %c1_i32 = arith.constant 1 : i32
    %0 = arith.muli %arg0, %c1_i32 : i32
    %c0_i32 = arith.constant 0 : i32
    %1 = arith.addi %c0_i32, %0 : i32
    %c0_i32_0 = arith.constant 0 : i32
    %2 = arith.subi %arg1, %c0_i32_0 : i32
    %3 = arith.addi %1, %2 : i32
    %c0_i32_1 = arith.constant 0 : i32
    %c0_i32_2 = arith.constant 0 : i32
    return %c0_i32_1, %3 : i32, i32
  }
  func.func @transform_2(%arg0: i32, %arg1: i32) -> (i32, i32, i32, i32) {
    %c0_i32 = arith.constant 0 : i32
    %c0_i32_0 = arith.constant 0 : i32
    %c0_i32_1 = arith.constant 0 : i32
    %c0_i32_2 = arith.constant 0 : i32
    return %c0_i32, %arg0, %c0_i32_0, %c0_i32_1 : i32, i32, i32, i32
  }
}

</mosaic_0001>

<bundles_post_ra>
// kernel: _update_metrics.3
= control target key start
LH: loop header
LB: loop body
LE: loop exit
PB: predicated region body
PF: predicated region fallthrough
CT: control target
= control target key end

     0   :  { %v60_v0 = vlaneseq  ;;  %vm70_vm0 = vcmask 1044480   ;;  %v320_v1 = vmov 0.0   ;;  %s412_s1 = inlined_call_operand.vmem [shape: f32[1,512], index: 1, kind: input, shape index: {}]   ;;  %s413_s0 = inlined_call_operand.vmem [shape: f32[5,512], index: 0, kind: input, shape index: {}]   ;;  %s414_s2 = inlined_call_operand.vmem [shape: f32[1,1,6,128], index: 2, kind: output, shape index: {}]  }
   0x1   :  { %56 = vst [vmem:[#allocation2 + $0x10] sm:$0x1f] %v320_v1  ;;  %57 = vst [vmem:[#allocation2] sm:$0x1f] %v320_v1  ;;  %v65_v2 = vld [vmem:[%s413_s0] sm:$0x1f] }
   0x2   :  { %58 = vst [vmem:[#allocation2 + $0x18] sm:$0x1f] %v320_v1  ;;  %59 = vst [vmem:[#allocation2 + $0x8] sm:$0x1f] %v320_v1  ;;  %v66_v3 = vld [vmem:[%s413_s0 + $0x8] sm:$0x1f] }
   0x3   :  { %vm343_vm1 = vcmp.lt.s32.totalorder %v60_v0, 512  ;;  %v350_v5 = vld [vmem:[%s412_s1] sm:$0xf]  ;;  %v67_v6 = vld [vmem:[%s413_s0 + $0x10] sm:$0x1f]  ;;  %v71_v7 = vsel %vm70_vm0, %v65_v2, -inf }
   0x4   :  { %64 = vst.msk [vmem:[#allocation3] sm:$0xf] %vm343_vm1, %v320_v1  ;;  %v78_v8 = vsel %vm70_vm0, %v66_v3, -inf  ;;  %v85_v9 = vsel %vm70_vm0, %v67_v6, -inf  ;;  %v68_v10 = vld [vmem:[%s413_s0 + $0x18] sm:$0x1f] }
   0x5   :  { %v72_v11 = vrot.slane %v71_v7, 4  ;;  %v79_v12 = vrot.slane %v78_v8, 4  ;;  %vm204_vm2 = vcmp.gt.f32.partialorder %v350_v5, 0.0  ;;  %v86_v13 = vrot.slane %v85_v9, 4 }
   0x6   :  { %v92_v16 = vsel %vm70_vm0, %v68_v10, -inf  ;;  %v365_v18 = vsel %vm204_vm2, 1.0, %v320_v1 }
   0x7   :  { %v73_v14 = vmax.f32 %v71_v7, %v72_v11  ;;  %v80_v15 = vmax.f32 %v78_v8, %v79_v12  ;;  %v87_v17 = vmax.f32 %v85_v9, %v86_v13  ;;  %v93_v22 = vrot.slane %v92_v16, 4 }
   0x9   :  { %v74_v19 = vrot.slane %v73_v14, 2  ;;  %v81_v20 = vrot.slane %v80_v15, 2  ;;  %v88_v21 = vrot.slane %v87_v17, 2  ;;  %v94_v28 = vmax.f32 %v92_v16, %v93_v22 }
   0xa   :  { %v176_v22 = vshrl.u32 %v60_v0, 7 }
   0xb   :  { %v248_v23 = vld [vmem:[#allocation3] sm:$0xf]  ;;  %v75_v24 = vmax.f32 %v73_v14, %v74_v19  ;;  %v82_v25 = vmax.f32 %v80_v15, %v81_v20  ;;  %v89_v27 = vmax.f32 %v87_v17, %v88_v21  ;;  %v95_v32 = vrot.slane %v94_v28, 2 }
   0xc   :  { %v249_v26 = vadd.f32 %v365_v18, %v248_v23  ;;  %v293_v23 = vadd.f32 -1.0, %v350_v5 }
   0xd   :  { %v76_v29 = vrot.slane %v75_v24, 1  ;;  %v83_v30 = vrot.slane %v82_v25, 1  ;;  %v90_v31 = vrot.slane %v89_v27, 1  ;;  %v96_v36 = vmax.f32 %v94_v28, %v95_v32 }
   0xe   :  { %254 = vst.msk [vmem:[#allocation3] sm:$0xf] %vm343_vm1, %v249_v26 }
   0xf   :  { %v77_v33 = vmax.f32 %v75_v24, %v76_v29  ;;  %v84_v34 = vmax.f32 %v82_v25, %v83_v30  ;;  %v91_v35 = vmax.f32 %v89_v27, %v90_v31  ;;  %v97_v40 = vrot.slane %v96_v36, 1 }
  0x10   :  { %v388_v24 = vsub.s32 0, %v176_v22  ;;  %v186_v25 = vsub.s32 1, %v176_v22  ;;  %v190_v27 = vsub.s32 2, %v176_v22  ;;  %v177_v30 = vcvt.s32.f32 %v176_v22 }
  0x11   :  { %v370_v37 = vsub.f32 %v65_v2, %v77_v33  ;;  %v372_v38 = vsub.f32 %v66_v3, %v84_v34  ;;  %v374_v39 = vsub.f32 %v67_v6, %v91_v35  ;;  %v98_v44 = vmax.f32 %v96_v36, %v97_v40 }
  0x12   :  { %v183_v31 = vrot.slane %v293_v23, %v388_v24  ;;  %v187_v34 = vrot.slane %v293_v23, %v186_v25  ;;  %v215_v5 = vrot.slane %v365_v18, %v388_v24  ;;  %v194_v40 = vsub.s32 3, %v176_v22 }
  0x13   :  { %v103_v41 = vmul.f32 1.442695, %v370_v37  ;;  %v105_v42 = vmul.f32 1.442695, %v372_v38  ;;  %v107_v43 = vmul.f32 1.442695, %v374_v39  ;;  %v379_v45 = vsub.f32 %v68_v10, %v98_v44 }
  0x14   :  { %v219_v44 = vrot.slane %v365_v18, %v186_v25  ;;  %vm396_vm3 = vcmp.eq.f32.partialorder %v177_v30, %v183_v31  ;;  %vm201_vm4 = vcmp.eq.f32.partialorder %v177_v30, %v187_v34 }
  0x15   :  { %296 = vpow2.f32 %v103_v41  ;;  %v109_v46 = vmul.f32 1.442695, %v379_v45 }
  0x16   :  { %298 = vpow2.f32 %v105_v42 }
  0x17   :  { %300 = vpow2.f32 %v107_v43 }
  0x18   :  { %302 = vpow2.f32 %v109_v46  ;;  %v191_v46 = vrot.slane %v293_v23, %v190_v27 }
  0x1a   :  { %vm202_vm5 = vcmp.eq.f32.partialorder %v177_v30, %v191_v46 }
  0x22   :  { %v297_v47 = vpop.eup %296 }
  0x23   :  { %v299_v48 = vpop.eup %298  ;;  %v111_v49 = vsel %vm70_vm0, %v297_v47, 0.0 }
  0x24   :  { %v301_v50 = vpop.eup %300  ;;  %v112_v51 = vrot.slane %v111_v49, 4  ;;  %v118_v52 = vsel %vm70_vm0, %v299_v48, 0.0 }
  0x25   :  { %v119_v53 = vrot.slane %v118_v52, 4  ;;  %v125_v54 = vsel %vm70_vm0, %v301_v50, 0.0  ;;  %v303_v57 = vpop.eup %302 }
  0x26   :  { %v113_v55 = vadd.f32 %v112_v51, %v111_v49  ;;  %v126_v56 = vrot.slane %v125_v54, 4  ;;  %v132_v61 = vsel %vm70_vm0, %v303_v57, 0.0 }
  0x27   :  { %v120_v58 = vadd.f32 %v119_v53, %v118_v52  ;;  %v133_v63 = vrot.slane %v132_v61, 4 }
  0x28   :  { %v114_v59 = vrot.slane %v113_v55, 2  ;;  %v127_v60 = vadd.f32 %v126_v56, %v125_v54 }
  0x29   :  { %v121_v62 = vrot.slane %v120_v58, 2  ;;  %v134_v4 = vadd.f32 %v133_v63, %v132_v61  ;;  %v223_v61 = vrot.slane %v365_v18, %v190_v27 }
  0x2a   :  { %v115_v1 = vadd.f32 %v114_v59, %v113_v55  ;;  %v128_v2 = vrot.slane %v127_v60, 2 }
  0x2b   :  { %v122_v3 = vadd.f32 %v121_v62, %v120_v58  ;;  %v135_v9 = vrot.slane %v134_v4, 2  ;;  %v195_v58 = vrot.slane %v293_v23, %v194_v40 }
  0x2c   :  { %v116_v6 = vrot.slane %v115_v1, 1  ;;  %v129_v7 = vadd.f32 %v128_v2, %v127_v60 }
  0x2d   :  { %v123_v8 = vrot.slane %v122_v3, 1  ;;  %v136_v13 = vadd.f32 %v135_v9, %v134_v4  ;;  %vm203_vm6 = vcmp.eq.f32.partialorder %v177_v30, %v195_v58 }
  0x2e   :  { %v117_v10 = vadd.f32 %v116_v6, %v115_v1  ;;  %v130_v11 = vrot.slane %v129_v7, 1  ;;  %v236_v1 = vld [vmem:[#allocation2 + $0x10] sm:$0x1f] }
  0x2f   :  { %v124_v12 = vadd.f32 %v123_v8, %v122_v3  ;;  %v137_v17 = vrot.slane %v136_v13, 1 }
  0x30   :  { %304 = vlog2.f32 %v117_v10  ;;  %v155_v14 = vsub.f32 %v117_v10, %v297_v47  ;;  %v131_v15 = vadd.f32 %v130_v11, %v129_v7  ;;  %v237_v7 = vld [vmem:[#allocation2] sm:$0x1f]  ;;  %v238_v10 = vld [vmem:[#allocation2 + $0x18] sm:$0x1f] }
  0x31   :  { %306 = vlog2.f32 %v124_v12  ;;  %v156_v16 = vsub.f32 %v124_v12, %v299_v48  ;;  %v138_v20 = vadd.f32 %v137_v17, %v136_v13  ;;  %v227_v12 = vrot.slane %v365_v18, %v194_v40  ;;  %v262_v17 = vld [vmem:[#allocation3 + $0x1] sm:$0x1]  ;;  %v270_v18 = vld [vmem:[#allocation3 + $0x3] sm:$0x1] }
  0x32   :  { %308 = vlog2.f32 %v155_v14  ;;  %v157_v19 = vsub.f32 %v131_v15, %v301_v50 }
  0x33   :  { %310 = vlog2.f32 %v156_v16  ;;  %v158_v21 = vsub.f32 %v138_v20, %v303_v57  ;;  %v259_v16 = vld [vmem:[#allocation3] sm:$0x1] }
  0x34   :  { %312 = vlog2.f32 %v131_v15  ;;  %v263_v25 = vadd.f32 %v262_v17, %v259_v16 }
  0x35   :  { %314 = vlog2.f32 %v157_v19 }
  0x36   :  { %316 = vlog2.f32 %v138_v20 }
  0x37   :  { %318 = vlog2.f32 %v158_v21  ;;  %v239_v21 = vld [vmem:[#allocation2 + $0x8] sm:$0x1f] }
  0x3d   :  { %v305_v26 = vpop.eup %304 }
  0x3e   :  { %v307_v28 = vpop.eup %306  ;;  %v140_v29 = vmul.f32 0.6931472, %v305_v26  ;;  %v266_v26 = vld [vmem:[#allocation3 + $0x2] sm:$0x1] }
  0x3f   :  { %v309_v32 = vpop.eup %308  ;;  %v142_v33 = vmul.f32 0.6931472, %v307_v28  ;;  %v267_v28 = vadd.f32 %v266_v26, %v263_v25 }
  0x40   :  { %v311_v35 = vpop.eup %310  ;;  %v147_v0 = vsub.f32 %v370_v37, %v140_v29  ;;  %v160_v36 = vmul.f32 0.6931472, %v309_v32 }
  0x41   :  { %v313_v41 = vpop.eup %312  ;;  %v148_v42 = vsub.f32 %v372_v38, %v142_v33  ;;  %v162_v43 = vmul.f32 0.6931472, %v311_v35  ;;  %v271_v32 = vadd.f32 %v270_v18, %v267_v28 }
  0x42   :  { %v315_v47 = vpop.eup %314  ;;  %v151_v48 = vmax.f32 %v147_v0, -100.0  ;;  %v167_v49 = vsub.f32 %v160_v36, %v140_v29  ;;  %v144_v37 = vmul.f32 0.6931472, %v313_v41 }
  0x43   :  { %v317_v51 = vpop.eup %316  ;;  %v152_v52 = vmax.f32 %v148_v42, -100.0  ;;  %v168_v53 = vsub.f32 %v162_v43, %v142_v33  ;;  %v164_v54 = vmul.f32 0.6931472, %v315_v47  ;;  %v276_v36 = vrot.slane %v271_v32, %v388_v24 }
  0x44   :  { %v319_v55 = vpop.eup %318  ;;  %v171_v56 = vmax.f32 %v167_v49, -100.0  ;;  %v149_v38 = vsub.f32 %v374_v39, %v144_v37  ;;  %v146_v57 = vmul.f32 0.6931472, %v317_v51 }
  0x45   :  { %v172_v59 = vmax.f32 %v168_v53, -100.0  ;;  %v169_v60 = vsub.f32 %v164_v54, %v144_v37  ;;  %v166_v62 = vmul.f32 0.6931472, %v319_v55 }
  0x46   :  { %v207_v63 = vsel %vm396_vm3, %v151_v48, %v171_v56  ;;  %v153_v2 = vmax.f32 %v149_v38, -100.0  ;;  %v150_v3 = vsub.f32 %v379_v45, %v146_v57 }
  0x47   :  { %v232_v4 = vmul.f32 %v215_v5, %v207_v63  ;;  %v208_v6 = vsel %vm201_vm4, %v152_v52, %v172_v59  ;;  %v173_v39 = vmax.f32 %v169_v60, -100.0  ;;  %v170_v8 = vsub.f32 %v166_v62, %v146_v57 }
  0x48   :  { %v233_v9 = vmul.f32 %v219_v44, %v208_v6  ;;  %v154_v11 = vmax.f32 %v150_v3, -100.0 }
  0x49   :  { %v240_v13 = vadd.f32 %v236_v1, %v232_v4  ;;  %v209_v14 = vsel %vm202_vm5, %v153_v2, %v173_v39  ;;  %v174_v15 = vmax.f32 %v170_v8, -100.0 }
  0x4a   :  { %v241_v19 = vadd.f32 %v237_v7, %v233_v9  ;;  %v234_v20 = vmul.f32 %v223_v61, %v209_v14 }
  0x4b   :  { %244 = vst [vmem:[#allocation2 + $0x10] sm:$0x1f] %v240_v13  ;;  %v210_v45 = vsel %vm203_vm6, %v154_v11, %v174_v15 }
  0x4c   :  { %245 = vst [vmem:[#allocation2] sm:$0x1f] %v241_v19  ;;  %v242_v22 = vadd.f32 %v238_v10, %v234_v20  ;;  %v235_v23 = vmul.f32 %v227_v12, %v210_v45 }
  0x4e   :  { %246 = vst [vmem:[#allocation2 + $0x18] sm:$0x1f] %v242_v22  ;;  %v243_v27 = vadd.f32 %v239_v21, %v235_v23 }
  0x50   :  { %247 = vst [vmem:[#allocation2 + $0x8] sm:$0x1f] %v243_v27 }
  0x52   :  { %v258_v29 = vld [vmem:[#allocation2 + $0x10] sm:$0x1f] }
  0x53   :  { %v260_v30 = vld [vmem:[#allocation2] sm:$0x1f] }
  0x54   :  { %v261_v31 = vadd.f32 %v260_v30, %v258_v29 }
  0x55   :  { %v264_v33 = vld [vmem:[#allocation2 + $0x18] sm:$0x1f] }
  0x56   :  { %v265_v34 = vadd.f32 %v264_v33, %v261_v31 }
  0x57   :  { %v268_v35 = vld [vmem:[#allocation2 + $0x8] sm:$0x1f] }
  0x58   :  { %v269_v0 = vadd.f32 %v268_v35, %v265_v34 }
  0x5a   :  { %v278_v5 = vsel %vm70_vm0, %v269_v0, %v276_v36 }
  0x5b   :  { %279 = vst [vmem:[%s414_s2] sm:$0x3f] %v278_v5 }

// kernel: _update_metrics.2
= control target key start
LH: loop header
LB: loop body
LE: loop exit
PB: predicated region body
PF: predicated region fallthrough
CT: control target
= control target key end

     0   :  { %vm50_vm0 = vcmask 1044480   ;;  %v141_v0 = vmov 0.0   ;;  %v77_v24 = vlaneseq  ;;  %s169_s0 = inlined_call_operand.vmem [shape: f32[5,128], index: 0, kind: input, shape index: {}]   ;;  %s170_s1 = inlined_call_operand.vmem [shape: f32[1,128], index: 1, kind: input, shape index: {}]   ;;  %s171_s2 = inlined_call_operand.vmem [shape: f32[1,1,6,128], index: 2, kind: output, shape index: {}]  }
   0x1   :  { %46 = vst [vmem:[#allocation2] sm:$0x1f] %v141_v0  ;;  %47 = vst [vmem:[#allocation3] sm:$0x1] %v141_v0  ;;  %v48_v1 = vld [vmem:[%s169_s0] sm:$0x1f] }
   0x2   :  { %v51_v2 = vsel %vm50_vm0, %v48_v1, -inf  ;;  %v49_v4 = vld [vmem:[%s170_s1] sm:$0x1]  ;;  %v78_v25 = vshrl.u32 %v77_v24, 7 }
   0x3   :  { %v52_v3 = vrot.slane %v51_v2, 4  ;;  %vm88_vm1 = vcmp.gt.f32.partialorder %v49_v4, 0.0  ;;  %v131_v26 = vadd.f32 -1.0, %v49_v4 }
   0x4   :  { %v132_v7 = vsel %vm88_vm1, 1.0, %v141_v0  ;;  %v84_v27 = vsub.s32 0, %v78_v25  ;;  %v79_v32 = vcvt.s32.f32 %v78_v25 }
   0x5   :  { %v53_v5 = vmax.f32 %v51_v2, %v52_v3 }
   0x6   :  { %v85_v31 = vrot.slane %v131_v26, %v84_v27  ;;  %v96_v37 = vrot.slane %v132_v7, %v84_v27 }
   0x7   :  { %v54_v6 = vrot.slane %v53_v5, 2 }
   0x8   :  { %v102_v8 = vld [vmem:[#allocation3] sm:$0x1]  ;;  %vm87_vm2 = vcmp.eq.f32.partialorder %v79_v32, %v85_v31  ;;  %v99_v40 = vld [vmem:[#allocation2] sm:$0x1f] }
   0x9   :  { %v55_v9 = vmax.f32 %v53_v5, %v54_v6  ;;  %v103_v10 = vadd.f32 %v132_v7, %v102_v8 }
   0xb   :  { %v56_v11 = vrot.slane %v55_v9, 1  ;;  %104 = vst [vmem:[#allocation3] sm:$0x1] %v103_v10 }
   0xd   :  { %v57_v12 = vmax.f32 %v55_v9, %v56_v11 }
   0xf   :  { %v58_v13 = vsub.f32 %v48_v1, %v57_v12 }
  0x11   :  { %v59_v14 = vmul.f32 1.442695, %v58_v13 }
  0x12   :  { %v133_v43 = vld [vmem:[#allocation3] ss:$0 sm:$0xff] }
  0x13   :  { %135 = vpow2.f32 %v59_v14 }
  0x20   :  { %v136_v15 = vpop.eup %135 }
  0x21   :  { %v61_v16 = vsel %vm50_vm0, %v136_v15, 0.0 }
  0x22   :  { %v62_v17 = vrot.slane %v61_v16, 4 }
  0x24   :  { %v63_v18 = vadd.f32 %v62_v17, %v61_v16 }
  0x26   :  { %v64_v19 = vrot.slane %v63_v18, 2 }
  0x28   :  { %v65_v20 = vadd.f32 %v64_v19, %v63_v18 }
  0x2a   :  { %v66_v21 = vrot.slane %v65_v20, 1 }
  0x2c   :  { %v67_v22 = vadd.f32 %v66_v21, %v65_v20 }
  0x2e   :  { %137 = vlog2.f32 %v67_v22  ;;  %v72_v23 = vsub.f32 %v67_v22, %v136_v15 }
  0x30   :  { %139 = vlog2.f32 %v72_v23 }
  0x3b   :  { %v138_v28 = vpop.eup %137 }
  0x3c   :  { %v69_v29 = vmul.f32 0.6931472, %v138_v28 }
  0x3d   :  { %v140_v30 = vpop.eup %139 }
  0x3e   :  { %v70_v33 = vsub.f32 %v58_v13, %v69_v29  ;;  %v74_v34 = vmul.f32 0.6931472, %v140_v30 }
  0x40   :  { %v71_v35 = vmax.f32 %v70_v33, -100.0  ;;  %v75_v36 = vsub.f32 %v74_v34, %v69_v29 }
  0x42   :  { %v76_v38 = vmax.f32 %v75_v36, -100.0 }
  0x44   :  { %v91_v39 = vsel %vm87_vm2, %v71_v35, %v76_v38 }
  0x45   :  { %v98_v41 = vmul.f32 %v96_v37, %v91_v39 }
  0x47   :  { %v100_v42 = vadd.f32 %v99_v40, %v98_v41 }
  0x49   :  { %101 = vst [vmem:[#allocation2] sm:$0x1f] %v100_v42 }
  0x50   :  { %v108_v44 = vld [vmem:[#allocation2] sm:$0x1f] }
  0x51   :  { %v116_v45 = vsel %vm50_vm0, %v108_v44, %v133_v43 }
  0x52   :  { %117 = vst [vmem:[%s171_s2] sm:$0x3f] %v116_v45 }

</bundles_post_ra>
